<compile_context>
chip_gen: v5e
topology: v5e:2x2
jax: 0.10.0
libtpu: 0.0.40
codegen_flags: <defaults>
</compile_context>

<pallas_src>
import functools

import jax
import jax.numpy as jnp
from jax import lax
from jax.experimental import pallas as pl
from jax.experimental.pallas import tpu as pltpu


def _channel_attention_kernel(w1t_ref, w2t_ref, x_ref, out_ref,
                              sum_acc, max_acc, *, hw, thw, inv_hw, mask_tail):
    """Grid: (batch_block, hw_tile).  x block: (TB, C, THW), spatial on lanes."""
    t = pl.program_id(1)

    @pl.when(t == 0)
    def _init():
        sum_acc[...] = jnp.zeros_like(sum_acc)
        max_acc[...] = jnp.full_like(max_acc, -jnp.inf)

    x = x_ref[...].astype(jnp.float32)                          # (TB, C, THW)
    if mask_tail:
        # Last spatial tile is padded with unspecified data -> mask it out.
        lane = lax.broadcasted_iota(jnp.int32, x.shape, 2)
        valid = (t * thw + lane) < hw
        x_sum = jnp.where(valid, x, 0.0)
        x_max = jnp.where(valid, x, -jnp.inf)
    else:
        x_sum = x
        x_max = x

    sum_acc[...] = sum_acc[...] + jnp.sum(x_sum, axis=2)        # (TB, C)
    max_acc[...] = jnp.maximum(max_acc[...], jnp.max(x_max, axis=2))

    @pl.when(t == pl.num_programs(1) - 1)
    def _finalize():
        w1t = w1t_ref[...]                                      # (C, Cr)
        w2t = w2t_ref[...]                                      # (Cr, C)

        def mlp(v):                                             # (TB, C) -> (TB, C)
            h = jnp.maximum(
                jnp.dot(v, w1t, preferred_element_type=jnp.float32), 0.0)
            return jnp.dot(h, w2t, preferred_element_type=jnp.float32)

        avg = sum_acc[...] * inv_hw
        logits = mlp(avg) + mlp(max_acc[...])
        ca = jax.nn.sigmoid(logits)                             # (TB, C)
        out_ref[:, 0, :] = ca.astype(out_ref.dtype)             # lane-dense store


def _choose_tiles(B, C, HW, itemsize, target_bytes):
    """Pick (TB, THW) so one x block is ~target_bytes.

    Large images: TB=1, THW a multiple of 128 sized by bytes (tail masked).
    Small images: full spatial extent per block, pack TB images per block,
    but keep >=2 batch blocks when B>=2 so both v7x TensorCores have work.
    """
    per_image = C * HW * itemsize
    if per_image >= target_bytes:
        tb = 1
        thw = (target_bytes // (C * itemsize)) // 128 * 128
        thw = max(thw, 128)
        thw = min(thw, HW)
    else:
        thw = HW
        tb = max(1, min(B, target_bytes // per_image))
        if B >= 2:
            tb = min(tb, (B + 1) // 2)
    return tb, thw


def channel_attention_forward(x_nchw, fc1_w, fc2_w, *,
                              target_block_bytes=8 * 1024 * 1024):
    """x_nchw: (B, C, H, W); fc1_w: (Cr, C[,1,1]); fc2_w: (C, Cr[,1,1]).

    Returns the channel-attention map of shape (B, C, 1, 1).
    """
    B, C, H, W = x_nchw.shape
    Cr = fc1_w.shape[0]
    w1 = jnp.asarray(fc1_w).reshape(Cr, C)
    w2 = jnp.asarray(fc2_w).reshape(C, Cr)
    HW = H * W

    itemsize = jnp.dtype(x_nchw.dtype).itemsize
    TB, THW = _choose_tiles(B, C, HW, itemsize, target_block_bytes)
    nb = pl.cdiv(B, TB)
    nt = pl.cdiv(HW, THW)

    # Contiguous reshape (no HBM transpose); keep the caller's dtype so bf16
    # inputs halve HBM traffic.  Pre-transpose weights so the in-kernel MLP is
    # plain row-major matmuls.
    x_flat = x_nchw.reshape(B, C, HW)
    w1t = w1.T.astype(jnp.float32)                              # (C, Cr)
    w2t = w2.T.astype(jnp.float32)                              # (Cr, C)

    kernel = functools.partial(
        _channel_attention_kernel,
        hw=HW, thw=THW, inv_hw=1.0 / float(HW),
        mask_tail=(HW % THW != 0))

    # Raise the scoped-VMEM limit enough for double-buffered x blocks plus
    # weights/scratch; stays well under v7x's 64 MiB physical VMEM.
    block_bytes = TB * C * THW * itemsize
    vmem_limit = int(min(max(2 * block_bytes + 4 * 1024 * 1024,
                             16 * 1024 * 1024),
                         48 * 1024 * 1024))

    grid_spec = pltpu.PrefetchScalarGridSpec(
        num_scalar_prefetch=0,
        grid=(nb, nt),
        in_specs=[
            pl.BlockSpec((C, Cr), lambda b, t: (0, 0)),          # fc1^T (resident)
            pl.BlockSpec((Cr, C), lambda b, t: (0, 0)),          # fc2^T (resident)
            pl.BlockSpec((TB, C, THW), lambda b, t: (b, 0, t)),  # x, spatial on lanes
        ],
        out_specs=pl.BlockSpec((TB, 1, C), lambda b, t: (b, 0, 0)),
        scratch_shapes=[
            pltpu.VMEM((TB, C), jnp.float32),                    # running sum
            pltpu.VMEM((TB, C), jnp.float32),                    # running max
        ],
    )

    out = pl.pallas_call(
        kernel,
        out_shape=jax.ShapeDtypeStruct((B, 1, C), x_nchw.dtype),
        grid_spec=grid_spec,
        compiler_params=pltpu.CompilerParams(
            dimension_semantics=("parallel", "arbitrary"),
            vmem_limit_bytes=vmem_limit),
    )(w1t, w2t, x_flat)

    return out.reshape(B, C, 1, 1)


def channel_attention_reference(x_nchw, fc1_w, fc2_w):
    """Pure-JAX reference mirroring the PyTorch module."""
    Cr, C = fc1_w.shape[0], x_nchw.shape[1]
    w1 = jnp.asarray(fc1_w).reshape(Cr, C)
    w2 = jnp.asarray(fc2_w).reshape(C, Cr)
    avg = jnp.mean(x_nchw, axis=(2, 3))
    mx = jnp.max(x_nchw, axis=(2, 3))

    def mlp(v):
        return jnp.maximum(v @ w1.T, 0.0) @ w2.T

    return jax.nn.sigmoid(mlp(avg) + mlp(mx))[:, :, None, None]


if __name__ == "__main__":
    key = jax.random.PRNGKey(0)

    def run_case(B, C, H, W, ratio, target_bytes, k):
        Cr = max(1, C // ratio)
        kx, k1, k2 = jax.random.split(k, 3)
        x = jax.random.normal(kx, (B, C, H, W), jnp.float32)
        fc1_w = jax.random.normal(k1, (Cr, C), jnp.float32) * 0.2
        fc2_w = jax.random.normal(k2, (C, Cr), jnp.float32) * 0.2
        out = jax.block_until_ready(
            channel_attention_forward(x, fc1_w, fc2_w,
                                      target_block_bytes=target_bytes))
        ref = channel_attention_reference(x, fc1_w, fc2_w)
        assert out.shape == (B, C, 1, 1)
        assert jnp.allclose(out, ref, atol=1e-5, rtol=1e-5), (B, C, H, W)

    k0, k1, k2 = jax.random.split(key, 3)
    # Primary case (module defaults: ratio=16 -> C//ratio = 2 hidden channels).
    run_case(2, 32, 16, 16, 16, 8 * 1024 * 1024, k0)
    # Spatial tiling + masked tail path (HW=153 split into THW=128 tiles).
    run_case(2, 32, 9, 17, 16, 16 * 1024, k1)
    # Batch-packing path with a padded batch tail (B=5 packed 3 images/block).
    run_case(5, 32, 4, 4, 16, 8 * 1024, k2)

    print("KERNEL_OK")
</pallas_src>

<mosaic_0001>
module attributes {stable_mosaic.version = 11 : i64} {
  func.func @_channel_attention_kernel(%arg0: i32, %arg1: i32, %arg2: memref<32x2xf32, #tpu.memory_space<vmem>>, %arg3: memref<2x32xf32, #tpu.memory_space<vmem>>, %arg4: memref<1x32x256xf32, #tpu.memory_space<vmem>>, %arg5: memref<1x1x32xf32, #tpu.memory_space<vmem>>, %arg6: memref<1x32xf32, #tpu.memory_space<vmem>>, %arg7: memref<1x32xf32, #tpu.memory_space<vmem>>) attributes {dimension_semantics = [#tpu.dimension_semantics<parallel>, #tpu.dimension_semantics<arbitrary>], iteration_bounds = array<i64: 2, 1>, scalar_prefetch = 0 : i64, scratch_operands = 2 : i64, tpu.core_type = #tpu.core_type<tc>, window_params = [{pipeline_mode = #tpu.pipeline_mode<synchronous>, transform_indices = @transform_0, window_bounds = array<i64: 32, 2>}, {pipeline_mode = #tpu.pipeline_mode<synchronous>, transform_indices = @transform_1, window_bounds = array<i64: 2, 32>}, {transform_indices = @transform_2, window_bounds = array<i64: 1, 32, 256>}, {transform_indices = @transform_3, window_bounds = array<i64: 1, 1, 32>}]} {
    %c0_i32 = arith.constant 0 : i32
    %0 = arith.cmpi eq, %arg1, %c0_i32 : i32
    %1 = arith.extui %0 : i1 to i32
    %c0_i32_0 = arith.constant 0 : i32
    %2 = arith.cmpi ne, %1, %c0_i32_0 : i32
    scf.if %2 {
      %cst_14 = arith.constant 0.000000e+00 : f32
      %15 = vector.broadcast %cst_14 : f32 to vector<1x32xf32>
      %c0_15 = arith.constant 0 : index
      %c0_16 = arith.constant 0 : index
      %16 = vector.load %arg6[%c0_15, %c0_16] : memref<1x32xf32, #tpu.memory_space<vmem>>, vector<1x32xf32>
      tpu.vector_store %arg6[%c0_15, %c0_16], %15 {strides = array<i32>} : memref<1x32xf32, #tpu.memory_space<vmem>>, vector<1x32xf32>,
      %cst_17 = arith.constant 0xFF800000 : f32
      %17 = vector.broadcast %cst_17 : f32 to vector<1x32xf32>
      %c0_18 = arith.constant 0 : index
      %c0_19 = arith.constant 0 : index
      %18 = vector.load %arg7[%c0_18, %c0_19] : memref<1x32xf32, #tpu.memory_space<vmem>>, vector<1x32xf32>
      tpu.vector_store %arg7[%c0_18, %c0_19], %17 {strides = array<i32>} : memref<1x32xf32, #tpu.memory_space<vmem>>, vector<1x32xf32>,
    } else {
    }
    %c0 = arith.constant 0 : index
    %c0_1 = arith.constant 0 : index
    %c0_2 = arith.constant 0 : index
    %3 = vector.load %arg4[%c0, %c0_1, %c0_2] : memref<1x32x256xf32, #tpu.memory_space<vmem>>, vector<1x32x256xf32>
    %c0_3 = arith.constant 0 : index
    %c0_4 = arith.constant 0 : index
    %4 = vector.load %arg6[%c0_3, %c0_4] : memref<1x32xf32, #tpu.memory_space<vmem>>, vector<1x32xf32>
    %cst = arith.constant dense<0.000000e+00> : vector<1x32xf32>
    %5 = vector.multi_reduction <add>, %3, %cst [2] : vector<1x32x256xf32> to vector<1x32xf32>
    %6 = arith.addf %4, %5 : vector<1x32xf32>
    %c0_5 = arith.constant 0 : index
    %c0_6 = arith.constant 0 : index
    %7 = vector.load %arg6[%c0_5, %c0_6] : memref<1x32xf32, #tpu.memory_space<vmem>>, vector<1x32xf32>
    tpu.vector_store %arg6[%c0_5, %c0_6], %6 {strides = array<i32>} : memref<1x32xf32, #tpu.memory_space<vmem>>, vector<1x32xf32>,
    %c0_7 = arith.constant 0 : index
    %c0_8 = arith.constant 0 : index
    %8 = vector.load %arg7[%c0_7, %c0_8] : memref<1x32xf32, #tpu.memory_space<vmem>>, vector<1x32xf32>
    %cst_9 = arith.constant dense<0xFF800000> : vector<1x32xf32>
    %9 = vector.multi_reduction <maximumf>, %3, %cst_9 [2] : vector<1x32x256xf32> to vector<1x32xf32>
    %10 = arith.maximumf %8, %9 : vector<1x32xf32>
    %c0_10 = arith.constant 0 : index
    %c0_11 = arith.constant 0 : index
    %11 = vector.load %arg7[%c0_10, %c0_11] : memref<1x32xf32, #tpu.memory_space<vmem>>, vector<1x32xf32>
    tpu.vector_store %arg7[%c0_10, %c0_11], %10 {strides = array<i32>} : memref<1x32xf32, #tpu.memory_space<vmem>>, vector<1x32xf32>,
    %c0_i32_12 = arith.constant 0 : i32
    %12 = arith.cmpi eq, %arg1, %c0_i32_12 : i32
    %13 = arith.extui %12 : i1 to i32
    %c0_i32_13 = arith.constant 0 : i32
    %14 = arith.cmpi ne, %13, %c0_i32_13 : i32
    scf.if %14 {
      %c0_14 = arith.constant 0 : index
      %c0_15 = arith.constant 0 : index
      %15 = vector.load %arg2[%c0_14, %c0_15] : memref<32x2xf32, #tpu.memory_space<vmem>>, vector<32x2xf32>
      %c0_16 = arith.constant 0 : index
      %c0_17 = arith.constant 0 : index
      %16 = vector.load %arg3[%c0_16, %c0_17] : memref<2x32xf32, #tpu.memory_space<vmem>>, vector<2x32xf32>
      %c0_18 = arith.constant 0 : index
      %c0_19 = arith.constant 0 : index
      %17 = vector.load %arg6[%c0_18, %c0_19] : memref<1x32xf32, #tpu.memory_space<vmem>>, vector<1x32xf32>
      %cst_20 = arith.constant 3.906250e-03 : f32
      %18 = vector.broadcast %cst_20 : f32 to vector<1x32xf32>
      %19 = arith.mulf %17, %18 : vector<1x32xf32>
      %cst_21 = arith.constant dense<0.000000e+00> : vector<1x2xf32>
      %20 = tpu.matmul %19, %15, %cst_21 {dimension_numbers = #tpu.dot_dimension_numbers<[1], [0], [0], [1], [0, 0, 1, 1], [], []>} : vector<1x32xf32>, vector<32x2xf32>, vector<1x2xf32> -> vector<1x2xf32>
      %cst_22 = arith.constant 0.000000e+00 : f32
      %21 = vector.broadcast %cst_22 : f32 to vector<1x2xf32>
      %22 = arith.maximumf %20, %21 : vector<1x2xf32>
      %cst_23 = arith.constant dense<0.000000e+00> : vector<1x32xf32>
      %23 = tpu.matmul %22, %16, %cst_23 {dimension_numbers = #tpu.dot_dimension_numbers<[1], [0], [0], [1], [0, 0, 1, 1], [], []>} : vector<1x2xf32>, vector<2x32xf32>, vector<1x32xf32> -> vector<1x32xf32>
      %c0_24 = arith.constant 0 : index
      %c0_25 = arith.constant 0 : index
      %24 = vector.load %arg7[%c0_24, %c0_25] : memref<1x32xf32, #tpu.memory_space<vmem>>, vector<1x32xf32>
      %cst_26 = arith.constant dense<0.000000e+00> : vector<1x2xf32>
      %25 = tpu.matmul %24, %15, %cst_26 {dimension_numbers = #tpu.dot_dimension_numbers<[1], [0], [0], [1], [0, 0, 1, 1], [], []>} : vector<1x32xf32>, vector<32x2xf32>, vector<1x2xf32> -> vector<1x2xf32>
      %cst_27 = arith.constant 0.000000e+00 : f32
      %26 = vector.broadcast %cst_27 : f32 to vector<1x2xf32>
      %27 = arith.maximumf %25, %26 : vector<1x2xf32>
      %cst_28 = arith.constant dense<0.000000e+00> : vector<1x32xf32>
      %28 = tpu.matmul %27, %16, %cst_28 {dimension_numbers = #tpu.dot_dimension_numbers<[1], [0], [0], [1], [0, 0, 1, 1], [], []>} : vector<1x2xf32>, vector<2x32xf32>, vector<1x32xf32> -> vector<1x32xf32>
      %29 = arith.addf %23, %28 : vector<1x32xf32>
      %30 = arith.negf %29 : vector<1x32xf32>
      %31 = math.exp %30 : vector<1x32xf32>
      %cst_29 = arith.constant 1.000000e+00 : f32
      %32 = vector.broadcast %cst_29 : f32 to vector<1x32xf32>
      %33 = arith.addf %32, %31 : vector<1x32xf32>
      %34 = arith.divf %32, %33 : vector<1x32xf32>
      %c0_30 = arith.constant 0 : index
      %c0_31 = arith.constant 0 : index
      %c0_32 = arith.constant 0 : index
      %35 = vector.load %arg5[%c0_30, %c0_31, %c0_32] : memref<1x1x32xf32, #tpu.memory_space<vmem>>, vector<1x1x32xf32>
      %36 = vector.shape_cast %35 : vector<1x1x32xf32> to vector<1x32xf32>
      %37 = vector.shape_cast %34 : vector<1x32xf32> to vector<1x1x32xf32>
      tpu.vector_store %arg5[%c0_30, %c0_31, %c0_32], %37 {strides = array<i32>} : memref<1x1x32xf32, #tpu.memory_space<vmem>>, vector<1x1x32xf32>,
    } else {
    }
    return
  }
  func.func @transform_0(%arg0: i32, %arg1: i32) -> (i32, i32) {
    %c0_i32 = arith.constant 0 : i32
    %c0_i32_0 = arith.constant 0 : i32
    %c0_i32_1 = arith.constant 0 : i32
    return %c0_i32, %c0_i32_0 : i32, i32
  }
  func.func @transform_1(%arg0: i32, %arg1: i32) -> (i32, i32) {
    %c0_i32 = arith.constant 0 : i32
    %c0_i32_0 = arith.constant 0 : i32
    %c0_i32_1 = arith.constant 0 : i32
    return %c0_i32, %c0_i32_0 : i32, i32
  }
  func.func @transform_2(%arg0: i32, %arg1: i32) -> (i32, i32, i32) {
    %c0_i32 = arith.constant 0 : i32
    %c0_i32_0 = arith.constant 0 : i32
    return %arg0, %c0_i32, %arg1 : i32, i32, i32
  }
  func.func @transform_3(%arg0: i32, %arg1: i32) -> (i32, i32, i32) {
    %c0_i32 = arith.constant 0 : i32
    %c0_i32_0 = arith.constant 0 : i32
    %c0_i32_1 = arith.constant 0 : i32
    return %arg0, %c0_i32, %c0_i32_0 : i32, i32, i32
  }
}

</mosaic_0001>

<bundles_post_ra>
// kernel: tpu_custom_call.1
= control target key start
LH: loop header
LB: loop body
LE: loop exit
PB: predicated region body
PF: predicated region fallthrough
CT: control target
= control target key end

     0   :  { %8 = vsyncpa [#allocation5], 0  ;;  %s1061_s0 = inlined_call_operand.vmem [shape: f32[32,2], index: 0, kind: input, shape index: {}]   ;;  %s1062_s1 = inlined_call_operand.vmem [shape: f32[2,32], index: 1, kind: input, shape index: {}]   ;;  %s1063_s2 = inlined_call_operand.hbm [shape: f32[2,32,256], index: 2, kind: input, shape index: {}]   ;;  %s1064_s3 = inlined_call_operand.hbm [shape: f32[2,1,32], index: 3, kind: output, shape index: {}]  }
   0x1   :  { %10 = vsyncpa [#allocation5 + $0x1], 0 }
   0x2   :  { %11 = vsyncpa [#allocation6], 0 }
   0x3   :  { %13 = vsyncpa [#allocation6 + $0x1], 0  ;;  %s912_s12 = smov 0   ;;  %s914_s13 = smov 0  }
   0x4   :  { %s916_s14 = smov 0   ;;  %s918_s15 = smov 0  }
   0x5   :  { %s920_s16 = smov 0   ;;  %s922_s17 = smov 0  }
   0x6 LB: > { %s680_s18 = sadd.s32 4294967295, %s885_s17   ;;  %s681_s19 = sadd.s32 4294967294, %s885_s17   ;;  %s885_s17 = sphi %s922_s17, %s19_s17   ;;  %s881_s16 = sphi %s920_s16, %s1073_s16   ;;  %s877_s15 = sphi %s918_s15, %s1072_s15   ;;  %s873_s14 = sphi %s916_s14, %s1071_s14   ;;  %s869_s13 = sphi %s914_s13, %s1070_s13   ;;  %s865_s12 = sphi %s912_s12, %s1069_s12  }
   0x7   : > { %s31_s20 = sadd.s32 1, %s881_s16  ;;  %s82_s21 = sadd.s32 1, %s873_s14 }
   0x8   : > { %p33_p0 = scmp.ge.s32.totalorder %s31_s20, 2  ;;  %p89_p1 = scmp.ne.s32.totalorder %s873_s14, %s869_s13 }
   0x9   : > { %p90_p2 = scmp.eq.s32.totalorder %s885_s17, 0  ;;  %p95_p3 = scmp.ne.s32.totalorder %s869_s13, %s865_s12 }
   0xa   : > { %s1075_s20 = smov (%p33_p0, %s31_s20), 0  ;;  %p96_p5 = scmp.eq.s32.totalorder %s680_s18, 0 }
   0xb   : > { %p953_p4 = por %p90_p2, %p89_p1  ;;  %s77_s23 = ssub.s32 %s881_s16, %s1075_s20 }
   0xc   : > { %p119_p6 = scmp.eq.s32.totalorder %s680_s18, 1  ;;  %p80_p7 = scmp.eq.s32.totalorder %s77_s23, 0 }
   0xd   : > { %p959_p8 = por %p96_p5, %p95_p3  ;;  %p125_p10 = scmp.eq.s32.totalorder %s681_s19, 1 }
   0xe   : > { %p963_p9 = por %p119_p6, %p89_p1  ;;  %p683_p12 = scmp.ge.s32.totalorder %s885_s17, 2 }
   0xf   : > { %s968_s26 = scalar_select %p80_p7, %s873_s14, %s82_s21  }
  0x10   : > { %p970_p11 = por %p125_p10, %p95_p3  ;;  %p711_p13 = scmp.lt.s32.totalorder %s885_s17, 2 }
  0x11   : > { %s151_s28 = sand.u32 1, %s873_s14   ;;  %s698_s30 = sshll.u32 %s881_s16, 6 }
  0x12   : > { %s684_s29 = sshll.u32 %s151_s28, 6  ;;  %s162_s6 = scalar_lea.hbm %s1063_s2, %s698_s30 }
  0x13   : > { %s155_s7 = scalar_lea.vmem [#allocation4], %s684_s29  ;;  %s163_s9 = sshll.u32 %s162_s6, 4  ;;  %s164_s9 = int_to_ptr.hbm [resolvable:$true] %s163_s9 }
  0x14   : > { %s165_s8 = sshll.u32 %s155_s7, 4  ;;  %p704_p0 = pnand %p711_p13, %p953_p4  ;;  %s166_s8 = int_to_ptr.vmem [resolvable:$true] %s165_s8 }
  0x15   : > { %p687_p1 = scmp.ge.s32.totalorder %s885_s17, 1  ;;  %s152_s10 = scalar_lea.sflag [#allocation5], %s151_s28 }
  0x16   : > { %s887_s11 = smov 256   ;;  %s888_s18 = smov 16  }
  0x17   : > { %706 = dma.hbm_to_vmem [thread:$0]  (!%p704_p0), %s164_s9, 1024, %s166_s8, %s152_s10, %s887_s11, %s887_s11, %s888_s18  }
  0x18   : > { %p173_p2 = scmp.lt.s32.totalorder %s885_s17, 3 }
  0x1a   : > { %p174_p3 = pnand %p687_p1, %p173_p2 }
  0x1b   : > { %s986_s19 = sand.u32 (!%p174_p3), 1, %s869_s13  }
  0x1c   : > { %177 = sbr.rel (%p174_p3) target bundleno = 696 (0x2b8), region = 32  ;;  %s688_s21 = sshll.u32 (!%p174_p3), %s986_s19, 6 }
  0x1d   : > { %s180_s23 = scalar_lea.sflag (!%p174_p3), [#allocation5], %s986_s19  ;;  %s183_s29 = scalar_lea.vmem (!%p174_p3), [#allocation4], %s688_s21 }
  0x21   : > { %856 = dma.done.wait (%p959_p8), %s180_s23, 1024  }
  0x22   : > { %858 = vsyncadd (%p959_p8), %s180_s23, 4294966272  ;;  %v214_v0 = vld [vmem:[%s183_s29] sm:$0xff]  ;;  %v215_v1 = vld [vmem:[%s183_s29 + $0x8] sm:$0xff]  ;;  %v889_v16 = vmov 0   ;;  %vm211_vm0 = vcmask 253952   ;;  %vm331_vm1 = vcmask 130112   ;;  %s599_s18 = scalar_lea.hbm %s1064_s3, %s877_s15 }
  0x23   : > { %v223_v2 = vadd.f32 %v215_v1, %v214_v0  ;;  %v218_v3 = vld [vmem:[%s183_s29 + $0x20] sm:$0xff]  ;;  %v219_v4 = vld [vmem:[%s183_s29 + $0x28] sm:$0xff]  ;;  %v346_v5 = vmax.f32 %v214_v0, %v215_v1  ;;  %v216_v7 = vld [vmem:[%s183_s29 + $0x10] sm:$0xff]  ;;  %766 = vset.pattern.permute.xlu2 %v889_v16  ;;  %767 = vset.pattern.permute.xlu0 %v889_v16  ;;  %vm335_vm2 = vcmask 195712   ;;  %vm339_vm3 = vcmask 261312   ;;  %s205_s21 = scalar_lea.vmem [#allocation7], %s986_s19 }
  0x24   : > { %v229_v6 = vadd.f32 %v219_v4, %v218_v3  ;;  %v217_v8 = vld [vmem:[%s183_s29 + $0x18] sm:$0xff]  ;;  %v220_v9 = vld [vmem:[%s183_s29 + $0x30] sm:$0xff]  ;;  %v352_v14 = vmax.f32 %v218_v3, %v219_v4  ;;  %768 = vset.pattern.permute.xlu1 %v889_v16  ;;  %vm469_vm4 = vcmask 261120   ;;  %vm523_vm5 = vcmask 1041408   ;;  %s601_s23 = sshll.u32 %s205_s21, 4  ;;  %s591_s15 = scalar_lea.sflag [#allocation6], %s986_s19  ;;  %s602_s23 = int_to_ptr.vmem [resolvable:$true] %s601_s23 }
  0x25   : > { %224 = vadd.xlane.f32.xlu0 %v223_v2  ;;  %347 = vmax.xlane.f32.xlu2 %v346_v5  ;;  %v221_v10 = vld [vmem:[%s183_s29 + $0x38] sm:$0xff]  ;;  %v226_v11 = vadd.f32 %v217_v8, %v216_v7  ;;  %v349_v12 = vmax.f32 %v216_v7, %v217_v8  ;;  %vm519_vm6 = vcmask 15360   ;;  %s603_s29 = sshll.u32 %s599_s18, 4  ;;  %s823_s4 = scalar_lea.hbm %s1064_s3, 2  ;;  %s604_s29 = int_to_ptr.hbm [resolvable:$true] %s603_s29 }
  0x26   : > { %230 = vadd.xlane.f32.xlu1 %v229_v6  ;;  %v232_v13 = vadd.f32 %v221_v10, %v220_v9  ;;  %v355_v15 = vmax.f32 %v220_v9, %v221_v10  ;;  %s817_s22 = sshra.s32 %s604_s29, 4  ;;  %s818_s22 = int_to_ptr.hbm [resolvable:$true] %s817_s22 }
  0x27   : > { %s819_s24 = scalar_lea.hbm %s818_s22, 1  ;;  %p824_p7 = scmp.lt.s32.totalorder %s818_s22, %s1064_s3 }
  0x28   : > { %p820_p4 = scmp.ne.s32.totalorder %s818_s22, %s819_s24  ;;  %p825_p8 = scmp.lt.s32.totalorder %s823_s4, %s819_s24 }
  0x2a   : > { %p821_p5 = pnand %p820_p4, %p963_p9  ;;  %p826_p10 = por %p825_p8, %p824_p7 }
  0x2c   : > { %p822_p6 = pneg %p821_p5 }
  0x2d   : > { %227 = vadd.xlane.f32.xlu0 %v226_v11  ;;  %350 = vmax.xlane.f32.xlu2 %v349_v12 }
  0x2e   : > { %233 = vadd.xlane.f32.xlu1 %v232_v13  ;;  %p827_p13 = pnand %p826_p10, %p822_p6 }
  0x35   : > { %353 = vmax.xlane.f32.xlu0 %v352_v14 }
  0x36   : > { %356 = vmax.xlane.f32.xlu1 %v355_v15 }
  0x98   : > { %v225_v17 = vpop.xlane.xlu0 %224  ;;  %v348_v56 = vpop.xlane.xlu2 %347 }
  0x99   : > { %v239_v18 = vperm.slane %v225_v17, 0  ;;  %v240_v19 = vperm.slane %v225_v17, 1  ;;  %v241_v20 = vperm.slane %v225_v17, 2  ;;  %v242_v21 = vperm.slane %v225_v17, 3  ;;  %v231_v36 = vpop.xlane.xlu1 %230 }
  0x9a   : > { %v243_v22 = vperm.slane %v225_v17, 4  ;;  %v244_v23 = vperm.slane %v225_v17, 5  ;;  %v245_v24 = vperm.slane %v225_v17, 6  ;;  %v246_v25 = vperm.slane %v225_v17, 7 }
  0x9b   : > { %271 = vst [vmem:[#allocation1] ss:$9 sm:$0xff] %v239_v18  ;;  %v255_v37 = vperm.slane %v231_v36, 0  ;;  %v256_v38 = vperm.slane %v231_v36, 1  ;;  %v257_v39 = vperm.slane %v231_v36, 2  ;;  %v258_v41 = vperm.slane %v231_v36, 3 }
  0x9c   : > { %273 = vst [vmem:[#allocation1 + $0x1] ss:$9 sm:$0xff] %v240_v19  ;;  %v259_v42 = vperm.slane %v231_v36, 4  ;;  %v260_v43 = vperm.slane %v231_v36, 5  ;;  %v261_v44 = vperm.slane %v231_v36, 6  ;;  %v262_v45 = vperm.slane %v231_v36, 7 }
  0x9d   : > { %275 = vst [vmem:[#allocation1 + $0x2] ss:$9 sm:$0xff] %v241_v20  ;;  %v362_v57 = vperm.slane %v348_v56, 0  ;;  %v363_v58 = vperm.slane %v348_v56, 1  ;;  %v364_v59 = vperm.slane %v348_v56, 2  ;;  %v365_v61 = vperm.slane %v348_v56, 3 }
  0x9e   : > { %277 = vst [vmem:[#allocation1 + $0x3] ss:$9 sm:$0xff] %v242_v21  ;;  %v366_v62 = vperm.slane %v348_v56, 4  ;;  %v367_v63 = vperm.slane %v348_v56, 5  ;;  %v368_v0 = vperm.slane %v348_v56, 6  ;;  %v369_v1 = vperm.slane %v348_v56, 7 }
  0x9f   : > { %279 = vst [vmem:[#allocation1 + $0x4] ss:$9 sm:$0xff] %v243_v22 }
  0xa0   : > { %281 = vst [vmem:[#allocation1 + $0x5] ss:$9 sm:$0xff] %v244_v23  ;;  %v228_v26 = vpop.xlane.xlu0 %227  ;;  %v351_v2 = vpop.xlane.xlu2 %350 }
  0xa1   : > { %283 = vst [vmem:[#allocation1 + $0x6] ss:$9 sm:$0xff] %v245_v24  ;;  %v247_v27 = vperm.slane %v228_v26, 0  ;;  %v248_v28 = vperm.slane %v228_v26, 1  ;;  %v249_v29 = vperm.slane %v228_v26, 2  ;;  %v250_v31 = vperm.slane %v228_v26, 3  ;;  %v234_v46 = vpop.xlane.xlu1 %233 }
  0xa2   : > { %285 = vst [vmem:[#allocation1 + $0x7] ss:$9 sm:$0xff] %v246_v25  ;;  %v251_v32 = vperm.slane %v228_v26, 4  ;;  %v252_v33 = vperm.slane %v228_v26, 5  ;;  %v253_v34 = vperm.slane %v228_v26, 6  ;;  %v254_v35 = vperm.slane %v228_v26, 7 }
  0xa3   : > { %v263_v47 = vperm.slane %v234_v46, 0  ;;  %v264_v48 = vperm.slane %v234_v46, 1  ;;  %v265_v49 = vperm.slane %v234_v46, 2  ;;  %v266_v51 = vperm.slane %v234_v46, 3 }
  0xa4   : > { %v267_v52 = vperm.slane %v234_v46, 4  ;;  %v268_v53 = vperm.slane %v234_v46, 5  ;;  %v269_v54 = vperm.slane %v234_v46, 6  ;;  %v270_v55 = vperm.slane %v234_v46, 7 }
  0xa5   : > { %v370_v3 = vperm.slane %v351_v2, 0  ;;  %v371_v4 = vperm.slane %v351_v2, 1  ;;  %v372_v5 = vperm.slane %v351_v2, 2  ;;  %v373_v7 = vperm.slane %v351_v2, 3 }
  0xa6   : > { %v374_v8 = vperm.slane %v351_v2, 4  ;;  %v375_v9 = vperm.slane %v351_v2, 5  ;;  %v376_v10 = vperm.slane %v351_v2, 6  ;;  %v377_v11 = vperm.slane %v351_v2, 7 }
  0xa8   : > { %v354_v12 = vpop.xlane.xlu0 %353 }
  0xa9   : > { %v286_v30 = vld [vmem:[#allocation1] sm:$0xff]  ;;  %v378_v13 = vperm.slane %v354_v12, 0  ;;  %v379_v14 = vperm.slane %v354_v12, 1  ;;  %v380_v15 = vperm.slane %v354_v12, 2  ;;  %v381_v16 = vperm.slane %v354_v12, 3  ;;  %v357_v22 = vpop.xlane.xlu1 %356 }
  0xaa   : > { %287 = vst [vmem:[#allocation1] ss:$9 sm:$0xff] %v247_v27  ;;  %315 = vperm.xlu2 %766, %v286_v30   ;;  %v382_v18 = vperm.slane %v354_v12, 4  ;;  %v383_v19 = vperm.slane %v354_v12, 5  ;;  %v384_v20 = vperm.slane %v354_v12, 6  ;;  %v385_v21 = vperm.slane %v354_v12, 7 }
  0xab   : > { %288 = vst [vmem:[#allocation1 + $0x1] ss:$9 sm:$0xff] %v248_v28  ;;  %v386_v23 = vperm.slane %v357_v22, 0  ;;  %v387_v24 = vperm.slane %v357_v22, 1  ;;  %v388_v25 = vperm.slane %v357_v22, 2  ;;  %v389_v26 = vperm.slane %v357_v22, 3 }
  0xac   : > { %289 = vst [vmem:[#allocation1 + $0x2] ss:$9 sm:$0xff] %v249_v29  ;;  %v390_v28 = vperm.slane %v357_v22, 4  ;;  %v391_v29 = vperm.slane %v357_v22, 5  ;;  %v392_v30 = vperm.slane %v357_v22, 6 }
  0xad   : > { %290 = vst [vmem:[#allocation1 + $0x3] ss:$9 sm:$0xff] %v250_v31  ;;  %v393_v31 = vperm.slane %v357_v22, 7 }
  0xae   : > { %291 = vst [vmem:[#allocation1 + $0x4] ss:$9 sm:$0xff] %v251_v32 }
  0xaf   : > { %292 = vst [vmem:[#allocation1 + $0x5] ss:$9 sm:$0xff] %v252_v33  ;;  %v890_v33 = vmov 0.0  }
  0xb0   : > { %293 = vst [vmem:[#allocation1 + $0x6] ss:$9 sm:$0xff] %v253_v34  ;;  %v326_v34 = vlaneseq }
  0xb1   : > { %294 = vst [vmem:[#allocation1 + $0x7] ss:$9 sm:$0xff] %v254_v35 }
  0xb2   : > { %212 = vst.msk [vmem:[#allocation2] sm:$0x1] %vm211_vm0, %v890_v33  ;;  %v327_v36 = vand.u32 127, %v326_v34 }
  0xb8   : > { %v295_v40 = vld [vmem:[#allocation1] sm:$0xff] }
  0xb9   : > { %296 = vst [vmem:[#allocation1] ss:$9 sm:$0xff] %v255_v37  ;;  %318 = vperm.xlu0 %767, %v295_v40   ;;  %v329_v37 = vadd.s32 4294967288, %v327_v36  ;;  %v337_v40 = vadd.s32 4294967272, %v327_v36 }
  0xba   : > { %297 = vst [vmem:[#allocation1 + $0x1] ss:$9 sm:$0xff] %v256_v38 }
  0xbb   : > { %298 = vst [vmem:[#allocation1 + $0x2] ss:$9 sm:$0xff] %v257_v39  ;;  %v333_v39 = vadd.s32 4294967280, %v327_v36 }
  0xbc   : > { %299 = vst [vmem:[#allocation1 + $0x3] ss:$9 sm:$0xff] %v258_v41 }
  0xbd   : > { %300 = vst [vmem:[#allocation1 + $0x4] ss:$9 sm:$0xff] %v259_v42 }
  0xbe   : > { %301 = vst [vmem:[#allocation1 + $0x5] ss:$9 sm:$0xff] %v260_v43 }
  0xbf   : > { %302 = vst [vmem:[#allocation1 + $0x6] ss:$9 sm:$0xff] %v261_v44 }
  0xc0   : > { %303 = vst [vmem:[#allocation1 + $0x7] ss:$9 sm:$0xff] %v262_v45 }
  0xc7   : > { %v304_v50 = vld [vmem:[#allocation1] sm:$0xff] }
  0xc8   : > { %305 = vst [vmem:[#allocation1] ss:$9 sm:$0xff] %v263_v47  ;;  %321 = vperm.xlu1 %768, %v304_v50  }
  0xc9   : > { %306 = vst [vmem:[#allocation1 + $0x1] ss:$9 sm:$0xff] %v264_v48  ;;  %v222_v48 = vld [vmem:[#allocation2] sm:$0x1] }
  0xca   : > { %307 = vst [vmem:[#allocation1 + $0x2] ss:$9 sm:$0xff] %v265_v49 }
  0xcb   : > { %308 = vst [vmem:[#allocation1 + $0x3] ss:$9 sm:$0xff] %v266_v51 }
  0xcc   : > { %309 = vst [vmem:[#allocation1 + $0x4] ss:$9 sm:$0xff] %v267_v52  ;;  %v465_v52 = vld [vmem:[%s1061_s0 + $0x18] sm:$0xff] }
  0xcd   : > { %310 = vst [vmem:[#allocation1 + $0x5] ss:$9 sm:$0xff] %v268_v53  ;;  %v464_v53 = vld [vmem:[%s1061_s0 + $0x10] sm:$0xff]  ;;  %485 = vmatpush.msra.mxu0 %v465_v52  ;;  %510 = vmatpush.msra.mxu1 %v465_v52 }
  0xce   : > { %311 = vst [vmem:[#allocation1 + $0x6] ss:$9 sm:$0xff] %v269_v54  ;;  %v463_v54 = vld [vmem:[%s1061_s0 + $0x8] sm:$0xff] }
  0xcf   : > { %312 = vst [vmem:[#allocation1 + $0x7] ss:$9 sm:$0xff] %v270_v55  ;;  %486 = vmatpush.msra.mxu0 %v464_v53  ;;  %511 = vmatpush.msra.mxu1 %v464_v53  ;;  %v462_v55 = vld [vmem:[%s1061_s0] sm:$0xff] }
  0xd1   : > { %487 = vmatpush.msra.mxu0 %v463_v54  ;;  %512 = vmatpush.msra.mxu1 %v463_v54 }
  0xd3   : > { %488 = vmatpush.msra.mxu0 %v462_v55  ;;  %513 = vmatpush.msra.mxu1 %v462_v55 }
  0xd6   : > { %v313_v60 = vld [vmem:[#allocation1] sm:$0xff] }
  0xd7   : > { %394 = vst [vmem:[#allocation1] ss:$9 sm:$0xff] %v362_v57  ;;  %324 = vperm.xlu2 %766, %v313_v60  }
  0xd8   : > { %396 = vst [vmem:[#allocation1 + $0x1] ss:$9 sm:$0xff] %v363_v58  ;;  %v891_v58 = vmov -inf  }
  0xd9   : > { %398 = vst [vmem:[#allocation1 + $0x2] ss:$9 sm:$0xff] %v364_v59 }
  0xda   : > { %400 = vst [vmem:[#allocation1 + $0x3] ss:$9 sm:$0xff] %v365_v61 }
  0xdb   : > { %402 = vst [vmem:[#allocation1 + $0x4] ss:$9 sm:$0xff] %v366_v62 }
  0xdc   : > { %404 = vst [vmem:[#allocation1 + $0x5] ss:$9 sm:$0xff] %v367_v63 }
  0xdd   : > { %406 = vst [vmem:[#allocation1 + $0x6] ss:$9 sm:$0xff] %v368_v0 }
  0xde   : > { %408 = vst [vmem:[#allocation1 + $0x7] ss:$9 sm:$0xff] %v369_v1 }
  0xdf   : > { %213 = vst.msk [vmem:[#allocation3] sm:$0x1] %vm211_vm0, %v891_v58 }
  0xe5   : > { %v409_v6 = vld [vmem:[#allocation1] sm:$0xff] }
  0xe6   : > { %410 = vst [vmem:[#allocation1] ss:$9 sm:$0xff] %v370_v3  ;;  %438 = vperm.xlu2 %766, %v409_v6  }
  0xe7   : > { %411 = vst [vmem:[#allocation1 + $0x1] ss:$9 sm:$0xff] %v371_v4  ;;  %v345_v4 = vld [vmem:[#allocation3] sm:$0x1] }
  0xe8   : > { %412 = vst [vmem:[#allocation1 + $0x2] ss:$9 sm:$0xff] %v372_v5 }
  0xe9   : > { %413 = vst [vmem:[#allocation1 + $0x3] ss:$9 sm:$0xff] %v373_v7 }
  0xea   : > { %414 = vst [vmem:[#allocation1 + $0x4] ss:$9 sm:$0xff] %v374_v8 }
  0xeb   : > { %415 = vst [vmem:[#allocation1 + $0x5] ss:$9 sm:$0xff] %v375_v9  ;;  %v466_v9 = vld [vmem:[%s1062_s1] sm:$0x3] }
  0xec   : > { %416 = vst [vmem:[#allocation1 + $0x6] ss:$9 sm:$0xff] %v376_v10  ;;  %693 = vmatpush.msk.msra.mxu3 %vm523_vm5, %v466_v9  ;;  %691 = vmatpush.msk.msra.mxu2 %vm523_vm5, %v466_v9 }
  0xed   : > { %417 = vst [vmem:[#allocation1 + $0x7] ss:$9 sm:$0xff] %v377_v11 }
  0xf4   : > { %v418_v17 = vld [vmem:[#allocation1] sm:$0xff] }
  0xf5   : > { %441 = vperm.xlu1 %768, %v418_v17   ;;  %419 = vst [vmem:[#allocation1] ss:$9 sm:$0xff] %v378_v13 }
  0xf6   : > { %420 = vst [vmem:[#allocation1 + $0x1] ss:$9 sm:$0xff] %v379_v14 }
  0xf7   : > { %421 = vst [vmem:[#allocation1 + $0x2] ss:$9 sm:$0xff] %v380_v15 }
  0xf8   : > { %422 = vst [vmem:[#allocation1 + $0x3] ss:$9 sm:$0xff] %v381_v16 }
  0xf9   : > { %423 = vst [vmem:[#allocation1 + $0x4] ss:$9 sm:$0xff] %v382_v18 }
  0xfa   : > { %424 = vst [vmem:[#allocation1 + $0x5] ss:$9 sm:$0xff] %v383_v19 }
  0xfb   : > { %425 = vst [vmem:[#allocation1 + $0x6] ss:$9 sm:$0xff] %v384_v20 }
  0xfc   : > { %426 = vst [vmem:[#allocation1 + $0x7] ss:$9 sm:$0xff] %v385_v21 }
 0x103   : > { %v427_v27 = vld [vmem:[#allocation1] sm:$0xff] }
 0x104   : > { %444 = vperm.xlu2 %766, %v427_v27   ;;  %428 = vst [vmem:[#allocation1] ss:$9 sm:$0xff] %v386_v23  ;;  %v316_v35 = vpop.permute.xlu2 %315 }
 0x105   : > { %429 = vst [vmem:[#allocation1 + $0x1] ss:$9 sm:$0xff] %v387_v24  ;;  %v328_v43 = vperm.slane %v316_v35, %v327_v36 }
 0x106   : > { %430 = vst [vmem:[#allocation1 + $0x2] ss:$9 sm:$0xff] %v388_v25 }
 0x107   : > { %431 = vst [vmem:[#allocation1 + $0x3] ss:$9 sm:$0xff] %v389_v26 }
 0x108   : > { %432 = vst [vmem:[#allocation1 + $0x4] ss:$9 sm:$0xff] %v390_v28 }
 0x109   : > { %433 = vst [vmem:[#allocation1 + $0x5] ss:$9 sm:$0xff] %v391_v29 }
 0x10a   : > { %434 = vst [vmem:[#allocation1 + $0x6] ss:$9 sm:$0xff] %v392_v30 }
 0x10b   : > { %435 = vst [vmem:[#allocation1 + $0x7] ss:$9 sm:$0xff] %v393_v31 }
 0x112   : > { %v436_v32 = vld [vmem:[#allocation1] sm:$0xff] }
 0x113   : > { %447 = vperm.xlu1 %768, %v436_v32  }
 0x12b   : > { %v319_v38 = vpop.permute.xlu0 %318 }
 0x12c   : > { %v330_v41 = vperm.slane %v319_v38, %v329_v37 }
 0x12e   : > { %v332_v47 = vsel %vm331_vm1, %v330_v41, %v328_v43 }
 0x131   : > { %v325_v42 = vpop.permute.xlu2 %324 }
 0x132   : > { %v338_v46 = vperm.slane %v325_v42, %v337_v40 }
 0x13a   : > { %v322_v44 = vpop.permute.xlu1 %321 }
 0x13b   : > { %v334_v45 = vperm.slane %v322_v44, %v333_v39 }
 0x13d   : > { %v336_v49 = vsel %vm335_vm2, %v334_v45, %v332_v47 }
 0x13e   : > { %v340_v50 = vsel %vm339_vm3, %v338_v46, %v336_v49 }
 0x13f   : > { %v342_v51 = vadd.f32 %v340_v50, %v222_v48 }
 0x140   : > { %v439_v59 = vpop.permute.xlu2 %438 }
 0x141   : > { %344 = vst.msk [vmem:[#allocation2] sm:$0x1] %vm211_vm0, %v342_v51  ;;  %v449_v62 = vperm.slane %v439_v59, %v327_v36 }
 0x148   : > { %v467_v56 = vld [vmem:[#allocation2] sm:$0x1] }
 0x149   : > { %v468_v57 = vmul.f32 0.00390625, %v467_v56 }
 0x14b   : > { %689 = vmatmul.msk.f32.vlgmr.msra.gmra.mxu0 %vm469_vm4, %v468_v57 }
 0x15e   : > { %v445_v60 = vpop.permute.xlu2 %444 }
 0x15f   : > { %v452_v0 = vperm.slane %v445_v60, %v333_v39 }
 0x167   : > { %v442_v61 = vpop.permute.xlu1 %441 }
 0x168   : > { %v450_v63 = vperm.slane %v442_v61, %v329_v37 }
 0x16a   : > { %v451_v1 = vsel %vm331_vm1, %v450_v63, %v449_v62 }
 0x16b   : > { %v453_v2 = vsel %vm335_vm2, %v452_v0, %v451_v1 }
 0x185   : > { %v448_v3 = vpop.permute.xlu1 %447 }
 0x186   : > { %v454_v5 = vperm.slane %v448_v3, %v337_v40 }
 0x188   : > { %v455_v6 = vsel %vm339_vm3, %v454_v5, %v453_v2 }
 0x189   : > { %v457_v7 = vmax.f32 %v345_v4, %v455_v6 }
 0x18b   : > { %458 = vst.msk [vmem:[#allocation3] sm:$0x1] %vm211_vm0, %v457_v7 }
 0x192   : > { %v494_v8 = vld [vmem:[#allocation3] sm:$0x1] }
 0x193   : > { %690 = vmatmul.msk.f32.vlgmr.msra.gmra.mxu1 %vm469_vm4, %v494_v8 }
 0x1c8   : > { %v490_v10 = vpop.f32.mrf.mxu0 }
 0x1c9   : > { %v493_v11 = vmax.f32 %v490_v10, 0.0 }
 0x1cb   : > { %694 = vmatmul.msk.f32.vlgmr.msra.gmra.mxu3 %vm519_vm6, %v493_v11 }
 0x210   : > { %v515_v12 = vpop.f32.mrf.mxu1 }
 0x211   : > { %v518_v13 = vmax.f32 %v515_v12, 0.0 }
 0x213   : > { %692 = vmatmul.msk.f32.vlgmr.msra.gmra.mxu2 %vm519_vm6, %v518_v13 }
 0x24e   : > { %v567_v14 = vpop.f32.mrf.mxu3 }
 0x296   : > { %v544_v15 = vpop.f32.mrf.mxu2 }
 0x297   : > { %v568_v16 = vadd.f32 %v567_v14, %v544_v15 }
 0x299   : > { %v695_v17 = vmul.f32 -1.442695, %v568_v16 }
 0x29b   : > { %769 = vpow2.f32 %v695_v17 }
 0x2a1   : > { %v770_v18 = vpop.eup %769 }
 0x2a2   : > { %v573_v19 = vadd.f32 1.0, %v770_v18 }
 0x2a4   : > { %771 = vrcp.f32 %v573_v19  ;;  %v585_v23 = vand.u32 2147483648, %v573_v19  ;;  %v583_v25 = vand.u32 2147483647, %v573_v19  ;;  %vm579_vm8 = vweird.f32 %v573_v19 }
 0x2a6   : > { %v586_v27 = vor.u32 1.1754944e-38, %v585_v23  ;;  %vm584_vm10 = vcmp.eq.f32.partialorder %v583_v25, 8.507059e+37 }
 0x2aa   : > { %v772_v20 = vpop.eup %771 }
 0x2ab   : > { %v575_v21 = vmul.f32 %v772_v20, %v573_v19  ;;  %vm580_vm7 = vweird.f32 %v772_v20 }
 0x2ac   : > { %vm581_vm9 = vmor %vm579_vm8, %vm580_vm7 }
 0x2ad   : > { %v576_v22 = vsub.f32 1.0, %v575_v21 }
 0x2af   : > { %v577_v24 = vmul.f32 %v772_v20, %v576_v22 }
 0x2b1   : > { %v578_v26 = vadd.f32 %v772_v20, %v577_v24 }
 0x2b3   : > { %v582_v28 = vsel %vm581_vm9, %v772_v20, %v578_v26 }
 0x2b4   : > { %v587_v29 = vsel %vm584_vm10, %v586_v27, %v582_v28 }
 0x2b5   : > { %589 = vst.msk [vmem:[%s205_s21] sm:$0x1] %vm211_vm0, %v587_v29 }
 0x2b6   : > { %830 = shalt.err (!%p827_p13)
}
 0x2b7   : > { %701 = dma.vmem_to_hbm [thread:$0]  (%p963_p9), %s602_s23, 16, %s604_s29, %s591_s15  }
 0x2b8 PF: > { %s615_s19 = sand.u32 1, %s865_s12   ;;  %p708_p0 = pnand %p683_p12, %p970_p11 }
 0x2b9   : > { %s616_s7 = scalar_lea.sflag [#allocation6], %s615_s19 }
 0x2ba   : > { %p709_p1 = pneg %p708_p0 }
 0x2bc   : > { %860 = dma.done.wait (%p709_p1), %s616_s7, 16  }
 0x2bd   : > { %862 = vsyncadd (%p709_p1), %s616_s7, 4294967280  ;;  %s19_s17 = sadd.s32 1, %s885_s17   ;;  %s1069_s12 = smov %s869_s13 }
 0x2be   : > { %p16_p2 = scmp.ge.s32.totalorder %s19_s17, 4   ;;  %s1070_s13 = smov %s873_s14 }
 0x2bf   : > { %s1071_s14 = smov %s968_s26  ;;  %s1072_s15 = smov %s881_s16 }
 0x2c0   : > { %s1073_s16 = smov %s1075_s20  ;;  %18 = sbr.rel (!%p16_p2) target bundleno = 6 (0x6), region = 99 }
 0x2c5   :  { %621 = vsyncpa [#allocation5], 1 }
 0x2c6   :  { %623 = vsyncpa [#allocation5 + $0x1], 1 }
 0x2c7   :  { %624 = vsyncpa [#allocation6], 1 }
 0x2c8   :  { %626 = vsyncpa [#allocation6 + $0x1], 1 }

</bundles_post_ra>
